<compile_context>
chip_gen: v7x
topology: tpu7x:2x2x1
jax: 0.10.0
libtpu: 0.0.40
codegen_flags: <defaults>
</compile_context>

<pallas_src>
import functools
import math

import jax
import jax.numpy as jnp
from jax.experimental import pallas as pl
from jax.experimental.pallas import tpu as pltpu

LANE = 128


def _round_up(v, m):
    return (v + m - 1) // m * m


def _head_masks(num_heads, head_dim, hc_pad):
    """gt  [H, HCp] one-hot head-membership per output column (0 on padding cols).
       gtT [HCp, H] transpose, used for the all-heads score reduction on the MXU."""
    col = jnp.arange(hc_pad)
    eq = (col[None, :] // head_dim) == jnp.arange(num_heads)[:, None]
    valid = col[None, :] < num_heads * head_dim
    gt_f = (eq & valid).astype(jnp.float32)
    return gt_f.astype(jnp.bfloat16), gt_f.T  # (bf16 [H,HCp], f32 [HCp,H])


# ----------------------------------------------------------------------------
# Pallas kernel: one TransformerConv layer (+ optional fused BN + ReLU)
# grid = (num_edge_tiles,)  -- reduction over edges, output kept resident.
# ----------------------------------------------------------------------------
def _transformer_conv_kernel(
    x_ref, ea_ref, tsrc_ref, ttgt_ref, gt_ref, gtt_ref,
    wq_ref, bq_ref, wk_ref, bk_ref, wv_ref, bv_ref,
    we_ref, wskip_ref, bskip_ref,
    gamma_ref, beta_ref, mean_ref, var_ref,
    o_ref,
    xbf_sc, shift_sc, acc_sc, den_sc,
    *, inv_sqrt_c, apply_bn_relu, bn_eps,
):
    f32 = jnp.float32
    bf16 = jnp.bfloat16
    t = pl.program_id(0)
    nt = pl.num_programs(0)

    # ---- prologue (first edge tile): node-side prep + accumulator init -----
    @pl.when(t == 0)
    def _prologue():
        x = x_ref[...]
        xbf_sc[...] = x.astype(bf16)
        # Softmax range guard: subtracting ANY per-target-node constant leaves the
        # softmax unchanged, so we use <q_i, mean_j k_j>/sqrt(C) as a cheap node-side
        # shift (avoids the second edge pass an exact per-node max would require).
        q_n = jnp.dot(x, wq_ref[...], preferred_element_type=f32) + bq_ref[...]
        k_n = jnp.dot(x, wk_ref[...], preferred_element_type=f32) + bk_ref[...]
        k_mean = jnp.mean(k_n, axis=0, keepdims=True)
        shift_sc[...] = (jnp.dot(q_n * k_mean, gtt_ref[...],
                                 preferred_element_type=f32) * inv_sqrt_c).astype(bf16)
        acc_sc[...] = jnp.zeros_like(acc_sc)
        den_sc[...] = jnp.zeros_like(den_sc)

    # ---- per-edge-tile body (all heads at once) -----------------------------
    tsrc = tsrc_ref[...]                       # [TE, N]  bf16 one-hot (source node)
    ttgt = ttgt_ref[...]                       # [TE, N]  bf16 one-hot (target node)
    xb = xbf_sc[...]                           # [N, Fin] bf16

    # Gather node features first, project on the edge side (cheaper than gathering
    # HC-wide projections when Fin < H*C).
    x_src = jnp.dot(tsrc, xb, preferred_element_type=f32)     # [TE, Fin]
    x_dst = jnp.dot(ttgt, xb, preferred_element_type=f32)     # [TE, Fin]

    q_e = jnp.dot(x_dst, wq_ref[...], preferred_element_type=f32) + bq_ref[...]
    k_e = jnp.dot(x_src, wk_ref[...], preferred_element_type=f32) + bk_ref[...]
    v_e = jnp.dot(x_src, wv_ref[...], preferred_element_type=f32) + bv_ref[...]
    e_e = jnp.dot(ea_ref[...], we_ref[...], preferred_element_type=f32)  # lin_edge: no bias
    key = k_e + e_e
    val = v_e + e_e                                            # [TE, HCp]

    # Per-head scores for all heads in one MXU contraction: [TE, H].
    s = jnp.dot(q_e * key, gtt_ref[...], preferred_element_type=f32) * inv_sqrt_c
    shift_e = jnp.dot(ttgt, shift_sc[...], preferred_element_type=f32)   # [TE, H]
    p = jnp.exp(s - shift_e)                                   # E*H exps total (was H*E*N)
    p_b = p.astype(bf16)
    p_hc = jnp.dot(p_b, gt_ref[...], preferred_element_type=f32)         # [TE, HCp]
    contrib = (p_hc * val).astype(bf16)                        # [TE, HCp]

    # Single scatter-sum per quantity (contract the edge axis on the MXU).
    dims = (((0,), (0,)), ((), ()))
    acc_sc[...] += jax.lax.dot_general(ttgt, contrib, dims,
                                       preferred_element_type=f32)       # [N, HCp]
    den_sc[...] += jax.lax.dot_general(ttgt, p_b, dims,
                                       preferred_element_type=f32)       # [N, H]

    # ---- epilogue (last edge tile): normalize, skip, BN + ReLU --------------
    @pl.when(t == nt - 1)
    def _epilogue():
        x = x_ref[...]
        den_hc = jnp.dot(den_sc[...], gt_ref[...].astype(f32),
                         preferred_element_type=f32)           # broadcast per head -> HCp
        safe = jnp.where(den_hc > 0.0, den_hc, 1.0)            # isolated nodes / pad cols
        out = acc_sc[...] / safe
        out = out + jnp.dot(x, wskip_ref[...], preferred_element_type=f32) + bskip_ref[...]
        if apply_bn_relu:
            inv_std = jax.lax.rsqrt(var_ref[...] + bn_eps)
            out = (out - mean_ref[...]) * inv_std * gamma_ref[...] + beta_ref[...]
            out = jnp.maximum(out, 0.0)
            # dropout: identity (inference mode)
        o_ref[...] = out.astype(o_ref.dtype)


def transformer_conv_layer(x, edge_attr, tsrc, ttgt, p, *, num_heads, head_dim,
                           apply_bn_relu, edge_tile, bn_eps=1e-5):
    n, in_pad = x.shape
    e_pad, fe = edge_attr.shape
    hc_pad = p["wq"].shape[1]
    assert e_pad % edge_tile == 0
    grid = (e_pad // edge_tile,)
    gt_bf, gtt = _head_masks(num_heads, head_dim, hc_pad)

    kernel = functools.partial(
        _transformer_conv_kernel,
        inv_sqrt_c=1.0 / math.sqrt(head_dim),
        apply_bn_relu=apply_bn_relu, bn_eps=bn_eps,
    )

    def const_spec(shape):
        return pl.BlockSpec(shape, lambda t: (0, 0))

    def edge_spec(shape):
        return pl.BlockSpec(shape, lambda t: (t, 0))

    in_specs = [
        const_spec((n, in_pad)),            # x (f32)
        edge_spec((edge_tile, fe)),         # edge_attr tile
        edge_spec((edge_tile, n)),          # tsrc tile (bf16 one-hot)
        edge_spec((edge_tile, n)),          # ttgt tile (bf16 one-hot)
        const_spec((num_heads, hc_pad)),    # gt  (bf16)
        const_spec((hc_pad, num_heads)),    # gtT (f32)
        const_spec(p["wq"].shape), const_spec(p["bq"].shape),
        const_spec(p["wk"].shape), const_spec(p["bk"].shape),
        const_spec(p["wv"].shape), const_spec(p["bv"].shape),
        const_spec(p["we"].shape),
        const_spec(p["wskip"].shape), const_spec(p["bskip"].shape),
        const_spec(p["gamma"].shape), const_spec(p["beta"].shape),
        const_spec(p["mean"].shape), const_spec(p["var"].shape),
    ]
    out_spec = const_spec((n, hc_pad))      # resident accumulator output (lane-dense)
    scratch = [
        pltpu.VMEM((n, in_pad), jnp.bfloat16),    # bf16 copy of x (gather operand)
        pltpu.VMEM((n, num_heads), jnp.bfloat16), # per-node softmax shift
        pltpu.VMEM((n, hc_pad), jnp.float32),     # numerator accumulator
        pltpu.VMEM((n, num_heads), jnp.float32),  # denominator accumulator
    ]
    args = (x, edge_attr, tsrc, ttgt, gt_bf, gtt,
            p["wq"], p["bq"], p["wk"], p["bk"], p["wv"], p["bv"],
            p["we"], p["wskip"], p["bskip"],
            p["gamma"], p["beta"], p["mean"], p["var"])

    return pl.pallas_call(
        kernel,
        out_shape=jax.ShapeDtypeStruct((n, hc_pad), jnp.float32),
        grid_spec=pltpu.PrefetchScalarGridSpec(
            num_scalar_prefetch=0, grid=grid,
            in_specs=in_specs, out_specs=out_spec,
            scratch_shapes=scratch),
        compiler_params=pltpu.CompilerParams(
            dimension_semantics=("arbitrary",),   # edge axis is a reduction
            # Keep scoped VMEM below v7x's 64 MiB physical VMEM; edge_tile should be
            # sized so 2 double-buffered [TE, N] bf16 tiles + intermediates fit here.
            vmem_limit_bytes=48 * 1024 * 1024),
    )(*args)


def _pad_layer_params(p, in_pad, hc_pad):
    """Zero-pad weights/biases so the layer output is lane-dense (width multiple of 128)
    and the input width matches the (padded) width of x. Padding columns stay exactly 0."""
    hc = p["wq"].shape[1]

    def pad_w(w):
        return jnp.pad(w, ((0, in_pad - w.shape[0]), (0, hc_pad - hc)))

    def pad_b(b, val=0.0):
        return jnp.pad(b, ((0, 0), (0, hc_pad - hc)), constant_values=val)

    return dict(
        wq=pad_w(p["wq"]), bq=pad_b(p["bq"]),
        wk=pad_w(p["wk"]), bk=pad_b(p["bk"]),
        wv=pad_w(p["wv"]), bv=pad_b(p["bv"]),
        we=jnp.pad(p["we"], ((0, 0), (0, hc_pad - hc))),
        wskip=pad_w(p["wskip"]), bskip=pad_b(p["bskip"]),
        gamma=pad_b(p["gamma"], 1.0), beta=pad_b(p["beta"]),
        mean=pad_b(p["mean"]), var=pad_b(p["var"], 1.0),
    )


def graph_transformer_forward(x, edge_index, edge_attr, params, *, num_heads,
                              edge_tile=512):
    """Mirrors GraphTransformer.forward; returns (x, edge_attr)."""
    n = x.shape[0]
    e = edge_index.shape[1]
    te = max(16, _round_up(min(edge_tile, e), 16))  # bf16 sublane tiling: multiple of 16
    e_pad = _round_up(e, te)
    pad = e_pad - e

    # edge_index[0] = source j, edge_index[1] = target i (PyG source_to_target flow).
    # One-hot 0/1 values are exact in bf16 -> native-rate MXU gather/scatter, half the bytes.
    src_oh = jnp.pad(jax.nn.one_hot(edge_index[0], n, dtype=jnp.bfloat16), ((0, pad), (0, 0)))
    tgt_oh = jnp.pad(jax.nn.one_hot(edge_index[1], n, dtype=jnp.bfloat16), ((0, pad), (0, 0)))
    ea = jnp.pad(edge_attr, ((0, pad), (0, 0)))   # padded edges scatter with zero weight

    num_layers = len(params)
    h = x
    for i, lp in enumerate(params):
        last = i == num_layers - 1
        hc = lp["wq"].shape[1]
        head_dim = hc // num_heads
        hc_pad = _round_up(hc, LANE)
        lp_pad = _pad_layer_params(lp, in_pad=h.shape[1], hc_pad=hc_pad)
        h = transformer_conv_layer(
            h, ea, src_oh, tgt_oh, lp_pad,
            num_heads=num_heads, head_dim=head_dim,
            apply_bn_relu=not last, edge_tile=te,
        )
    out_dim = params[-1]["wq"].shape[1]
    return h[:, :out_dim], edge_attr


# ----------------------------------------------------------------------------
# Pure-JAX reference (segment ops) for correctness check
# ----------------------------------------------------------------------------
def _reference_layer(x, edge_attr, src, dst, p, *, num_heads, head_dim,
                     apply_bn_relu, bn_eps=1e-5):
    n = x.shape[0]
    hc = num_heads * head_dim
    q = (x @ p["wq"] + p["bq"]).reshape(n, num_heads, head_dim)
    k = (x @ p["wk"] + p["bk"]).reshape(n, num_heads, head_dim)
    v = (x @ p["wv"] + p["bv"]).reshape(n, num_heads, head_dim)
    e = (edge_attr @ p["we"]).reshape(-1, num_heads, head_dim)
    qe, ke, ve = q[dst], k[src] + e, v[src] + e
    score = (qe * ke).sum(-1) / math.sqrt(head_dim)                  # [E, H]
    m = jax.ops.segment_max(score, dst, num_segments=n)
    m = jnp.where(jnp.isfinite(m), m, 0.0)
    pexp = jnp.exp(score - m[dst])
    den = jax.ops.segment_sum(pexp, dst, num_segments=n)
    alpha = pexp / den[dst]
    out = jax.ops.segment_sum(ve * alpha[..., None], dst, num_segments=n).reshape(n, hc)
    out = out + x @ p["wskip"] + p["bskip"]
    if apply_bn_relu:
        out = (out - p["mean"]) * jax.lax.rsqrt(p["var"] + bn_eps) * p["gamma"] + p["beta"]
        out = jnp.maximum(out, 0.0)
    return out


def graph_transformer_reference(x, edge_index, edge_attr, params, *, num_heads):
    src, dst = edge_index[0], edge_index[1]
    num_layers = len(params)
    for i, lp in enumerate(params):
        last = i == num_layers - 1
        head_dim = lp["wq"].shape[1] // num_heads
        x = _reference_layer(x, edge_attr, src, dst, lp, num_heads=num_heads,
                             head_dim=head_dim, apply_bn_relu=not last)
    return x, edge_attr


# ----------------------------------------------------------------------------
# Deterministic parameter init
# ----------------------------------------------------------------------------
def init_layer_params(key, in_dim, hc_out, edge_dim, has_bn):
    ks = jax.random.split(key, 10)

    def lin(k, fan_in, fan_out):
        return jax.random.normal(k, (fan_in, fan_out), jnp.float32) / jnp.sqrt(float(fan_in))

    p = dict(
        wq=lin(ks[0], in_dim, hc_out),
        bq=0.01 * jax.random.normal(ks[1], (1, hc_out), jnp.float32),
        wk=lin(ks[2], in_dim, hc_out),
        bk=0.01 * jax.random.normal(ks[3], (1, hc_out), jnp.float32),
        wv=lin(ks[4], in_dim, hc_out),
        bv=0.01 * jax.random.normal(ks[5], (1, hc_out), jnp.float32),
        we=lin(ks[6], edge_dim, hc_out),                 # lin_edge: no bias in PyG
        wskip=lin(ks[7], in_dim, hc_out),
        bskip=0.01 * jax.random.normal(ks[8], (1, hc_out), jnp.float32),
    )
    if has_bn:
        kb = jax.random.split(ks[9], 4)
        p["gamma"] = 1.0 + 0.1 * jax.random.normal(kb[0], (1, hc_out), jnp.float32)
        p["beta"] = 0.1 * jax.random.normal(kb[1], (1, hc_out), jnp.float32)
        p["mean"] = 0.1 * jax.random.normal(kb[2], (1, hc_out), jnp.float32)
        p["var"] = 1.0 + 0.1 * jax.random.uniform(kb[3], (1, hc_out), jnp.float32)
    else:  # dummies (ignored by last layer)
        p["gamma"] = jnp.ones((1, hc_out), jnp.float32)
        p["beta"] = jnp.zeros((1, hc_out), jnp.float32)
        p["mean"] = jnp.zeros((1, hc_out), jnp.float32)
        p["var"] = jnp.ones((1, hc_out), jnp.float32)
    return p


if __name__ == "__main__":
    in_ch, hidden, out_ch, num_layers, heads = 8, 32, 16, 3, 4
    n_nodes, n_edges = 16, 40

    key = jax.random.PRNGKey(0)
    k_x, k_ei, k_ea, k_p = jax.random.split(key, 4)
    x = jax.random.normal(k_x, (n_nodes, in_ch), jnp.float32)
    edge_index = jax.random.randint(k_ei, (2, n_edges), 0, n_nodes)
    edge_attr = jax.random.normal(k_ea, (n_edges, in_ch), jnp.float32)

    dims_in = [in_ch] + [hidden] * (num_layers - 1)
    dims_out = [hidden] * (num_layers - 1) + [out_ch]
    layer_keys = jax.random.split(k_p, num_layers)
    params = [
        init_layer_params(layer_keys[i], dims_in[i], dims_out[i], in_ch,
                          has_bn=(i < num_layers - 1))
        for i in range(num_layers)
    ]

    # edge_tile=16 -> 3 edge tiles for E=40 (padded to 48): exercises the tiled
    # accumulator / prologue / epilogue path on a small graph.
    out, ea_out = graph_transformer_forward(
        x, edge_index, edge_attr, params, num_heads=heads, edge_tile=16)
    out = jax.block_until_ready(out)

    ref, _ = graph_transformer_reference(x, edge_index, edge_attr, params, num_heads=heads)
    assert out.shape == (n_nodes, out_ch), out.shape
    # bf16 one-hot gather/scatter matmuls + default (non-'highest') MXU precision
    # introduce ~0.5-1% per-layer rounding vs the f32 segment-op reference.
    assert jnp.allclose(out, ref, atol=5e-2, rtol=5e-2), (out, ref)
    print("KERNEL_OK")
</pallas_src>

<mosaic_0001>
module attributes {stable_mosaic.version = 11 : i64} {
  func.func @_transformer_conv_kernel(%arg0: i32, %arg1: memref<16x8xf32, #tpu.memory_space<vmem>>, %arg2: memref<16x8xf32, #tpu.memory_space<vmem>>, %arg3: memref<16x16xbf16, #tpu.memory_space<vmem>>, %arg4: memref<16x16xbf16, #tpu.memory_space<vmem>>, %arg5: memref<4x128xbf16, #tpu.memory_space<vmem>>, %arg6: memref<128x4xf32, #tpu.memory_space<vmem>>, %arg7: memref<8x128xf32, #tpu.memory_space<vmem>>, %arg8: memref<1x128xf32, #tpu.memory_space<vmem>>, %arg9: memref<8x128xf32, #tpu.memory_space<vmem>>, %arg10: memref<1x128xf32, #tpu.memory_space<vmem>>, %arg11: memref<8x128xf32, #tpu.memory_space<vmem>>, %arg12: memref<1x128xf32, #tpu.memory_space<vmem>>, %arg13: memref<8x128xf32, #tpu.memory_space<vmem>>, %arg14: memref<8x128xf32, #tpu.memory_space<vmem>>, %arg15: memref<1x128xf32, #tpu.memory_space<vmem>>, %arg16: memref<1x128xf32, #tpu.memory_space<vmem>>, %arg17: memref<1x128xf32, #tpu.memory_space<vmem>>, %arg18: memref<1x128xf32, #tpu.memory_space<vmem>>, %arg19: memref<1x128xf32, #tpu.memory_space<vmem>>, %arg20: memref<16x128xf32, #tpu.memory_space<vmem>>, %arg21: memref<16x8xbf16, #tpu.memory_space<vmem>>, %arg22: memref<16x4xbf16, #tpu.memory_space<vmem>>, %arg23: memref<16x128xf32, #tpu.memory_space<vmem>>, %arg24: memref<16x4xf32, #tpu.memory_space<vmem>>) attributes {dimension_semantics = [#tpu.dimension_semantics<arbitrary>], iteration_bounds = array<i64: 3>, scalar_prefetch = 0 : i64, scratch_operands = 4 : i64, tpu.core_type = #tpu.core_type<tc>, window_params = [{pipeline_mode = #tpu.pipeline_mode<synchronous>, transform_indices = @transform_0, window_bounds = array<i64: 16, 8>}, {transform_indices = @transform_1, window_bounds = array<i64: 16, 8>}, {transform_indices = @transform_2, window_bounds = array<i64: 16, 16>}, {transform_indices = @transform_3, window_bounds = array<i64: 16, 16>}, {pipeline_mode = #tpu.pipeline_mode<synchronous>, transform_indices = @transform_4, window_bounds = array<i64: 4, 128>}, {pipeline_mode = #tpu.pipeline_mode<synchronous>, transform_indices = @transform_5, window_bounds = array<i64: 128, 4>}, {pipeline_mode = #tpu.pipeline_mode<synchronous>, transform_indices = @transform_6, window_bounds = array<i64: 8, 128>}, {pipeline_mode = #tpu.pipeline_mode<synchronous>, transform_indices = @transform_7, window_bounds = array<i64: 1, 128>}, {pipeline_mode = #tpu.pipeline_mode<synchronous>, transform_indices = @transform_8, window_bounds = array<i64: 8, 128>}, {pipeline_mode = #tpu.pipeline_mode<synchronous>, transform_indices = @transform_9, window_bounds = array<i64: 1, 128>}, {pipeline_mode = #tpu.pipeline_mode<synchronous>, transform_indices = @transform_10, window_bounds = array<i64: 8, 128>}, {pipeline_mode = #tpu.pipeline_mode<synchronous>, transform_indices = @transform_11, window_bounds = array<i64: 1, 128>}, {pipeline_mode = #tpu.pipeline_mode<synchronous>, transform_indices = @transform_12, window_bounds = array<i64: 8, 128>}, {pipeline_mode = #tpu.pipeline_mode<synchronous>, transform_indices = @transform_13, window_bounds = array<i64: 8, 128>}, {pipeline_mode = #tpu.pipeline_mode<synchronous>, transform_indices = @transform_14, window_bounds = array<i64: 1, 128>}, {pipeline_mode = #tpu.pipeline_mode<synchronous>, transform_indices = @transform_15, window_bounds = array<i64: 1, 128>}, {pipeline_mode = #tpu.pipeline_mode<synchronous>, transform_indices = @transform_16, window_bounds = array<i64: 1, 128>}, {pipeline_mode = #tpu.pipeline_mode<synchronous>, transform_indices = @transform_17, window_bounds = array<i64: 1, 128>}, {pipeline_mode = #tpu.pipeline_mode<synchronous>, transform_indices = @transform_18, window_bounds = array<i64: 1, 128>}, {pipeline_mode = #tpu.pipeline_mode<synchronous>, transform_indices = @transform_19, window_bounds = array<i64: 16, 128>}]} {
    %c0_i32 = arith.constant 0 : i32
    %0 = arith.cmpi eq, %arg0, %c0_i32 : i32
    %1 = arith.extui %0 : i1 to i32
    %c0_i32_0 = arith.constant 0 : i32
    %2 = arith.cmpi ne, %1, %c0_i32_0 : i32
    scf.if %2 {
      %c0_48 = arith.constant 0 : index
      %c0_49 = arith.constant 0 : index
      %53 = vector.load %arg1[%c0_48, %c0_49] : memref<16x8xf32, #tpu.memory_space<vmem>>, vector<16x8xf32>
      %54 = arith.truncf %53 : vector<16x8xf32> to vector<16x8xbf16>
      %c0_50 = arith.constant 0 : index
      %c0_51 = arith.constant 0 : index
      %55 = vector.load %arg21[%c0_50, %c0_51] : memref<16x8xbf16, #tpu.memory_space<vmem>>, vector<16x8xbf16>
      tpu.vector_store %arg21[%c0_50, %c0_51], %54 {strides = array<i32>} : memref<16x8xbf16, #tpu.memory_space<vmem>>, vector<16x8xbf16>,
      %c0_52 = arith.constant 0 : index
      %c0_53 = arith.constant 0 : index
      %56 = vector.load %arg7[%c0_52, %c0_53] : memref<8x128xf32, #tpu.memory_space<vmem>>, vector<8x128xf32>
      %cst_54 = arith.constant dense<0.000000e+00> : vector<16x128xf32>
      %57 = tpu.matmul %53, %56, %cst_54 {dimension_numbers = #tpu.dot_dimension_numbers<[1], [0], [0], [1], [0, 0, 1, 1], [], []>} : vector<16x8xf32>, vector<8x128xf32>, vector<16x128xf32> -> vector<16x128xf32>
      %c0_55 = arith.constant 0 : index
      %c0_56 = arith.constant 0 : index
      %58 = vector.load %arg8[%c0_55, %c0_56] : memref<1x128xf32, #tpu.memory_space<vmem>>, vector<1x128xf32>
      %59 = vector.broadcast %58 : vector<1x128xf32> to vector<16x128xf32>
      %60 = arith.addf %57, %59 : vector<16x128xf32>
      %c0_57 = arith.constant 0 : index
      %c0_58 = arith.constant 0 : index
      %61 = vector.load %arg9[%c0_57, %c0_58] : memref<8x128xf32, #tpu.memory_space<vmem>>, vector<8x128xf32>
      %cst_59 = arith.constant dense<0.000000e+00> : vector<16x128xf32>
      %62 = tpu.matmul %53, %61, %cst_59 {dimension_numbers = #tpu.dot_dimension_numbers<[1], [0], [0], [1], [0, 0, 1, 1], [], []>} : vector<16x8xf32>, vector<8x128xf32>, vector<16x128xf32> -> vector<16x128xf32>
      %c0_60 = arith.constant 0 : index
      %c0_61 = arith.constant 0 : index
      %63 = vector.load %arg10[%c0_60, %c0_61] : memref<1x128xf32, #tpu.memory_space<vmem>>, vector<1x128xf32>
      %64 = vector.broadcast %63 : vector<1x128xf32> to vector<16x128xf32>
      %65 = arith.addf %62, %64 : vector<16x128xf32>
      %cst_62 = arith.constant dense<0.000000e+00> : vector<128xf32>
      %66 = vector.multi_reduction <add>, %65, %cst_62 [0] : vector<16x128xf32> to vector<128xf32>
      %67 = vector.shape_cast %66 : vector<128xf32> to vector<1x128xf32>
      %cst_63 = arith.constant 1.600000e+01 : f32
      %68 = vector.broadcast %cst_63 : f32 to vector<1x128xf32>
      %69 = arith.divf %67, %68 : vector<1x128xf32>
      %70 = vector.broadcast %69 : vector<1x128xf32> to vector<16x128xf32>
      %71 = arith.mulf %60, %70 : vector<16x128xf32>
      %c0_64 = arith.constant 0 : index
      %c0_65 = arith.constant 0 : index
      %72 = vector.load %arg6[%c0_64, %c0_65] : memref<128x4xf32, #tpu.memory_space<vmem>>, vector<128x4xf32>
      %cst_66 = arith.constant dense<0.000000e+00> : vector<16x4xf32>
      %73 = tpu.matmul %71, %72, %cst_66 {dimension_numbers = #tpu.dot_dimension_numbers<[1], [0], [0], [1], [0, 0, 1, 1], [], []>} : vector<16x128xf32>, vector<128x4xf32>, vector<16x4xf32> -> vector<16x4xf32>
      %cst_67 = arith.constant 0.353553385 : f32
      %74 = vector.broadcast %cst_67 : f32 to vector<16x4xf32>
      %75 = arith.mulf %73, %74 : vector<16x4xf32>
      %76 = arith.truncf %75 : vector<16x4xf32> to vector<16x4xbf16>
      %c0_68 = arith.constant 0 : index
      %c0_69 = arith.constant 0 : index
      %77 = vector.load %arg22[%c0_68, %c0_69] : memref<16x4xbf16, #tpu.memory_space<vmem>>, vector<16x4xbf16>
      tpu.vector_store %arg22[%c0_68, %c0_69], %76 {strides = array<i32>} : memref<16x4xbf16, #tpu.memory_space<vmem>>, vector<16x4xbf16>,
      %cst_70 = arith.constant 0.000000e+00 : f32
      %78 = vector.broadcast %cst_70 : f32 to vector<16x128xf32>
      %c0_71 = arith.constant 0 : index
      %c0_72 = arith.constant 0 : index
      %79 = vector.load %arg23[%c0_71, %c0_72] : memref<16x128xf32, #tpu.memory_space<vmem>>, vector<16x128xf32>
      tpu.vector_store %arg23[%c0_71, %c0_72], %78 {strides = array<i32>} : memref<16x128xf32, #tpu.memory_space<vmem>>, vector<16x128xf32>,
      %cst_73 = arith.constant 0.000000e+00 : f32
      %80 = vector.broadcast %cst_73 : f32 to vector<16x4xf32>
      %c0_74 = arith.constant 0 : index
      %c0_75 = arith.constant 0 : index
      %81 = vector.load %arg24[%c0_74, %c0_75] : memref<16x4xf32, #tpu.memory_space<vmem>>, vector<16x4xf32>
      tpu.vector_store %arg24[%c0_74, %c0_75], %80 {strides = array<i32>} : memref<16x4xf32, #tpu.memory_space<vmem>>, vector<16x4xf32>,
    } else {
    }
    %c0 = arith.constant 0 : index
    %c0_1 = arith.constant 0 : index
    %3 = vector.load %arg3[%c0, %c0_1] : memref<16x16xbf16, #tpu.memory_space<vmem>>, vector<16x16xbf16>
    %c0_2 = arith.constant 0 : index
    %c0_3 = arith.constant 0 : index
    %4 = vector.load %arg4[%c0_2, %c0_3] : memref<16x16xbf16, #tpu.memory_space<vmem>>, vector<16x16xbf16>
    %c0_4 = arith.constant 0 : index
    %c0_5 = arith.constant 0 : index
    %5 = vector.load %arg21[%c0_4, %c0_5] : memref<16x8xbf16, #tpu.memory_space<vmem>>, vector<16x8xbf16>
    %cst = arith.constant dense<0.000000e+00> : vector<16x8xf32>
    %6 = tpu.matmul %3, %5, %cst {dimension_numbers = #tpu.dot_dimension_numbers<[1], [0], [0], [1], [0, 0, 1, 1], [], []>} : vector<16x16xbf16>, vector<16x8xbf16>, vector<16x8xf32> -> vector<16x8xf32>
    %cst_6 = arith.constant dense<0.000000e+00> : vector<16x8xf32>
    %7 = tpu.matmul %4, %5, %cst_6 {dimension_numbers = #tpu.dot_dimension_numbers<[1], [0], [0], [1], [0, 0, 1, 1], [], []>} : vector<16x16xbf16>, vector<16x8xbf16>, vector<16x8xf32> -> vector<16x8xf32>
    %c0_7 = arith.constant 0 : index
    %c0_8 = arith.constant 0 : index
    %8 = vector.load %arg7[%c0_7, %c0_8] : memref<8x128xf32, #tpu.memory_space<vmem>>, vector<8x128xf32>
    %cst_9 = arith.constant dense<0.000000e+00> : vector<16x128xf32>
    %9 = tpu.matmul %7, %8, %cst_9 {dimension_numbers = #tpu.dot_dimension_numbers<[1], [0], [0], [1], [0, 0, 1, 1], [], []>} : vector<16x8xf32>, vector<8x128xf32>, vector<16x128xf32> -> vector<16x128xf32>
    %c0_10 = arith.constant 0 : index
    %c0_11 = arith.constant 0 : index
    %10 = vector.load %arg8[%c0_10, %c0_11] : memref<1x128xf32, #tpu.memory_space<vmem>>, vector<1x128xf32>
    %11 = vector.broadcast %10 : vector<1x128xf32> to vector<16x128xf32>
    %12 = arith.addf %9, %11 : vector<16x128xf32>
    %c0_12 = arith.constant 0 : index
    %c0_13 = arith.constant 0 : index
    %13 = vector.load %arg9[%c0_12, %c0_13] : memref<8x128xf32, #tpu.memory_space<vmem>>, vector<8x128xf32>
    %cst_14 = arith.constant dense<0.000000e+00> : vector<16x128xf32>
    %14 = tpu.matmul %6, %13, %cst_14 {dimension_numbers = #tpu.dot_dimension_numbers<[1], [0], [0], [1], [0, 0, 1, 1], [], []>} : vector<16x8xf32>, vector<8x128xf32>, vector<16x128xf32> -> vector<16x128xf32>
    %c0_15 = arith.constant 0 : index
    %c0_16 = arith.constant 0 : index
    %15 = vector.load %arg10[%c0_15, %c0_16] : memref<1x128xf32, #tpu.memory_space<vmem>>, vector<1x128xf32>
    %16 = vector.broadcast %15 : vector<1x128xf32> to vector<16x128xf32>
    %17 = arith.addf %14, %16 : vector<16x128xf32>
    %c0_17 = arith.constant 0 : index
    %c0_18 = arith.constant 0 : index
    %18 = vector.load %arg11[%c0_17, %c0_18] : memref<8x128xf32, #tpu.memory_space<vmem>>, vector<8x128xf32>
    %cst_19 = arith.constant dense<0.000000e+00> : vector<16x128xf32>
    %19 = tpu.matmul %6, %18, %cst_19 {dimension_numbers = #tpu.dot_dimension_numbers<[1], [0], [0], [1], [0, 0, 1, 1], [], []>} : vector<16x8xf32>, vector<8x128xf32>, vector<16x128xf32> -> vector<16x128xf32>
    %c0_20 = arith.constant 0 : index
    %c0_21 = arith.constant 0 : index
    %20 = vector.load %arg12[%c0_20, %c0_21] : memref<1x128xf32, #tpu.memory_space<vmem>>, vector<1x128xf32>
    %21 = vector.broadcast %20 : vector<1x128xf32> to vector<16x128xf32>
    %22 = arith.addf %19, %21 : vector<16x128xf32>
    %c0_22 = arith.constant 0 : index
    %c0_23 = arith.constant 0 : index
    %23 = vector.load %arg2[%c0_22, %c0_23] : memref<16x8xf32, #tpu.memory_space<vmem>>, vector<16x8xf32>
    %c0_24 = arith.constant 0 : index
    %c0_25 = arith.constant 0 : index
    %24 = vector.load %arg13[%c0_24, %c0_25] : memref<8x128xf32, #tpu.memory_space<vmem>>, vector<8x128xf32>
    %cst_26 = arith.constant dense<0.000000e+00> : vector<16x128xf32>
    %25 = tpu.matmul %23, %24, %cst_26 {dimension_numbers = #tpu.dot_dimension_numbers<[1], [0], [0], [1], [0, 0, 1, 1], [], []>} : vector<16x8xf32>, vector<8x128xf32>, vector<16x128xf32> -> vector<16x128xf32>
    %26 = arith.addf %17, %25 : vector<16x128xf32>
    %27 = arith.addf %22, %25 : vector<16x128xf32>
    %28 = arith.mulf %12, %26 : vector<16x128xf32>
    %c0_27 = arith.constant 0 : index
    %c0_28 = arith.constant 0 : index
    %29 = vector.load %arg6[%c0_27, %c0_28] : memref<128x4xf32, #tpu.memory_space<vmem>>, vector<128x4xf32>
    %cst_29 = arith.constant dense<0.000000e+00> : vector<16x4xf32>
    %30 = tpu.matmul %28, %29, %cst_29 {dimension_numbers = #tpu.dot_dimension_numbers<[1], [0], [0], [1], [0, 0, 1, 1], [], []>} : vector<16x128xf32>, vector<128x4xf32>, vector<16x4xf32> -> vector<16x4xf32>
    %cst_30 = arith.constant 0.353553385 : f32
    %31 = vector.broadcast %cst_30 : f32 to vector<16x4xf32>
    %32 = arith.mulf %30, %31 : vector<16x4xf32>
    %c0_31 = arith.constant 0 : index
    %c0_32 = arith.constant 0 : index
    %33 = vector.load %arg22[%c0_31, %c0_32] : memref<16x4xbf16, #tpu.memory_space<vmem>>, vector<16x4xbf16>
    %cst_33 = arith.constant dense<0.000000e+00> : vector<16x4xf32>
    %34 = tpu.matmul %4, %33, %cst_33 {dimension_numbers = #tpu.dot_dimension_numbers<[1], [0], [0], [1], [0, 0, 1, 1], [], []>} : vector<16x16xbf16>, vector<16x4xbf16>, vector<16x4xf32> -> vector<16x4xf32>
    %35 = arith.subf %32, %34 : vector<16x4xf32>
    %36 = math.exp %35 : vector<16x4xf32>
    %37 = arith.truncf %36 : vector<16x4xf32> to vector<16x4xbf16>
    %c0_34 = arith.constant 0 : index
    %c0_35 = arith.constant 0 : index
    %38 = vector.load %arg5[%c0_34, %c0_35] : memref<4x128xbf16, #tpu.memory_space<vmem>>, vector<4x128xbf16>
    %cst_36 = arith.constant dense<0.000000e+00> : vector<16x128xf32>
    %39 = tpu.matmul %37, %38, %cst_36 {dimension_numbers = #tpu.dot_dimension_numbers<[1], [0], [0], [1], [0, 0, 1, 1], [], []>} : vector<16x4xbf16>, vector<4x128xbf16>, vector<16x128xf32> -> vector<16x128xf32>
    %40 = arith.mulf %39, %27 : vector<16x128xf32>
    %41 = arith.truncf %40 : vector<16x128xf32> to vector<16x128xbf16>
    %c0_37 = arith.constant 0 : index
    %c0_38 = arith.constant 0 : index
    %42 = vector.load %arg23[%c0_37, %c0_38] : memref<16x128xf32, #tpu.memory_space<vmem>>, vector<16x128xf32>
    %cst_39 = arith.constant dense<0.000000e+00> : vector<16x128xf32>
    %43 = tpu.matmul %4, %41, %cst_39 {dimension_numbers = #tpu.dot_dimension_numbers<[0], [0], [1], [1], [0, 1, 1, 1], [], []>} : vector<16x16xbf16>, vector<16x128xbf16>, vector<16x128xf32> -> vector<16x128xf32>
    %44 = arith.addf %42, %43 : vector<16x128xf32>
    %c0_40 = arith.constant 0 : index
    %c0_41 = arith.constant 0 : index
    %45 = vector.load %arg23[%c0_40, %c0_41] : memref<16x128xf32, #tpu.memory_space<vmem>>, vector<16x128xf32>
    tpu.vector_store %arg23[%c0_40, %c0_41], %44 {strides = array<i32>} : memref<16x128xf32, #tpu.memory_space<vmem>>, vector<16x128xf32>,
    %c0_42 = arith.constant 0 : index
    %c0_43 = arith.constant 0 : index
    %46 = vector.load %arg24[%c0_42, %c0_43] : memref<16x4xf32, #tpu.memory_space<vmem>>, vector<16x4xf32>
    %cst_44 = arith.constant dense<0.000000e+00> : vector<16x4xf32>
    %47 = tpu.matmul %4, %37, %cst_44 {dimension_numbers = #tpu.dot_dimension_numbers<[0], [0], [1], [1], [0, 1, 1, 1], [], []>} : vector<16x16xbf16>, vector<16x4xbf16>, vector<16x4xf32> -> vector<16x4xf32>
    %48 = arith.addf %46, %47 : vector<16x4xf32>
    %c0_45 = arith.constant 0 : index
    %c0_46 = arith.constant 0 : index
    %49 = vector.load %arg24[%c0_45, %c0_46] : memref<16x4xf32, #tpu.memory_space<vmem>>, vector<16x4xf32>
    tpu.vector_store %arg24[%c0_45, %c0_46], %48 {strides = array<i32>} : memref<16x4xf32, #tpu.memory_space<vmem>>, vector<16x4xf32>,
    %c2_i32 = arith.constant 2 : i32
    %50 = arith.cmpi eq, %arg0, %c2_i32 : i32
    %51 = arith.extui %50 : i1 to i32
    %c0_i32_47 = arith.constant 0 : i32
    %52 = arith.cmpi ne, %51, %c0_i32_47 : i32
    scf.if %52 {
      %c0_48 = arith.constant 0 : index
      %c0_49 = arith.constant 0 : index
      %53 = vector.load %arg1[%c0_48, %c0_49] : memref<16x8xf32, #tpu.memory_space<vmem>>, vector<16x8xf32>
      %c0_50 = arith.constant 0 : index
      %c0_51 = arith.constant 0 : index
      %54 = vector.load %arg24[%c0_50, %c0_51] : memref<16x4xf32, #tpu.memory_space<vmem>>, vector<16x4xf32>
      %c0_52 = arith.constant 0 : index
      %c0_53 = arith.constant 0 : index
      %55 = vector.load %arg5[%c0_52, %c0_53] : memref<4x128xbf16, #tpu.memory_space<vmem>>, vector<4x128xbf16>
      %56 = arith.extf %55 : vector<4x128xbf16> to vector<4x128xf32>
      %cst_54 = arith.constant dense<0.000000e+00> : vector<16x128xf32>
      %57 = tpu.matmul %54, %56, %cst_54 {dimension_numbers = #tpu.dot_dimension_numbers<[1], [0], [0], [1], [0, 0, 1, 1], [], []>} : vector<16x4xf32>, vector<4x128xf32>, vector<16x128xf32> -> vector<16x128xf32>
      %cst_55 = arith.constant 0.000000e+00 : f32
      %58 = vector.broadcast %cst_55 : f32 to vector<16x128xf32>
      %59 = arith.cmpf ogt, %57, %58 : vector<16x128xf32>
      %cst_56 = arith.constant 1.000000e+00 : f32
      %60 = vector.broadcast %cst_56 : f32 to vector<16x128xf32>
      %61 = arith.select %59, %57, %60 : vector<16x128xi1>, vector<16x128xf32>
      %c0_57 = arith.constant 0 : index
      %c0_58 = arith.constant 0 : index
      %62 = vector.load %arg23[%c0_57, %c0_58] : memref<16x128xf32, #tpu.memory_space<vmem>>, vector<16x128xf32>
      %63 = arith.divf %62, %61 : vector<16x128xf32>
      %c0_59 = arith.constant 0 : index
      %c0_60 = arith.constant 0 : index
      %64 = vector.load %arg14[%c0_59, %c0_60] : memref<8x128xf32, #tpu.memory_space<vmem>>, vector<8x128xf32>
      %cst_61 = arith.constant dense<0.000000e+00> : vector<16x128xf32>
      %65 = tpu.matmul %53, %64, %cst_61 {dimension_numbers = #tpu.dot_dimension_numbers<[1], [0], [0], [1], [0, 0, 1, 1], [], []>} : vector<16x8xf32>, vector<8x128xf32>, vector<16x128xf32> -> vector<16x128xf32>
      %66 = arith.addf %63, %65 : vector<16x128xf32>
      %c0_62 = arith.constant 0 : index
      %c0_63 = arith.constant 0 : index
      %67 = vector.load %arg15[%c0_62, %c0_63] : memref<1x128xf32, #tpu.memory_space<vmem>>, vector<1x128xf32>
      %68 = vector.broadcast %67 : vector<1x128xf32> to vector<16x128xf32>
      %69 = arith.addf %66, %68 : vector<16x128xf32>
      %c0_64 = arith.constant 0 : index
      %c0_65 = arith.constant 0 : index
      %70 = vector.load %arg19[%c0_64, %c0_65] : memref<1x128xf32, #tpu.memory_space<vmem>>, vector<1x128xf32>
      %cst_66 = arith.constant 9.99999974E-6 : f32
      %71 = vector.broadcast %cst_66 : f32 to vector<1x128xf32>
      %72 = arith.addf %70, %71 : vector<1x128xf32>
      %73 = math.rsqrt %72 : vector<1x128xf32>
      %c0_67 = arith.constant 0 : index
      %c0_68 = arith.constant 0 : index
      %74 = vector.load %arg18[%c0_67, %c0_68] : memref<1x128xf32, #tpu.memory_space<vmem>>, vector<1x128xf32>
      %75 = vector.broadcast %74 : vector<1x128xf32> to vector<16x128xf32>
      %76 = arith.subf %69, %75 : vector<16x128xf32>
      %77 = vector.broadcast %73 : vector<1x128xf32> to vector<16x128xf32>
      %78 = arith.mulf %76, %77 : vector<16x128xf32>
      %c0_69 = arith.constant 0 : index
      %c0_70 = arith.constant 0 : index
      %79 = vector.load %arg16[%c0_69, %c0_70] : memref<1x128xf32, #tpu.memory_space<vmem>>, vector<1x128xf32>
      %80 = vector.broadcast %79 : vector<1x128xf32> to vector<16x128xf32>
      %81 = arith.mulf %78, %80 : vector<16x128xf32>
      %c0_71 = arith.constant 0 : index
      %c0_72 = arith.constant 0 : index
      %82 = vector.load %arg17[%c0_71, %c0_72] : memref<1x128xf32, #tpu.memory_space<vmem>>, vector<1x128xf32>
      %83 = vector.broadcast %82 : vector<1x128xf32> to vector<16x128xf32>
      %84 = arith.addf %81, %83 : vector<16x128xf32>
      %cst_73 = arith.constant 0.000000e+00 : f32
      %85 = vector.broadcast %cst_73 : f32 to vector<16x128xf32>
      %86 = arith.maximumf %84, %85 : vector<16x128xf32>
      %c0_74 = arith.constant 0 : index
      %c0_75 = arith.constant 0 : index
      %87 = vector.load %arg20[%c0_74, %c0_75] : memref<16x128xf32, #tpu.memory_space<vmem>>, vector<16x128xf32>
      tpu.vector_store %arg20[%c0_74, %c0_75], %86 {strides = array<i32>} : memref<16x128xf32, #tpu.memory_space<vmem>>, vector<16x128xf32>,
    } else {
    }
    return
  }
  func.func @transform_0(%arg0: i32) -> (i32, i32) {
    %c0_i32 = arith.constant 0 : i32
    %c0_i32_0 = arith.constant 0 : i32
    %c0_i32_1 = arith.constant 0 : i32
    return %c0_i32, %c0_i32_0 : i32, i32
  }
  func.func @transform_1(%arg0: i32) -> (i32, i32) {
    %c0_i32 = arith.constant 0 : i32
    %c0_i32_0 = arith.constant 0 : i32
    return %arg0, %c0_i32 : i32, i32
  }
  func.func @transform_2(%arg0: i32) -> (i32, i32) {
    %c0_i32 = arith.constant 0 : i32
    %c0_i32_0 = arith.constant 0 : i32
    return %arg0, %c0_i32 : i32, i32
  }
  func.func @transform_3(%arg0: i32) -> (i32, i32) {
    %c0_i32 = arith.constant 0 : i32
    %c0_i32_0 = arith.constant 0 : i32
    return %arg0, %c0_i32 : i32, i32
  }
  func.func @transform_4(%arg0: i32) -> (i32, i32) {
    %c0_i32 = arith.constant 0 : i32
    %c0_i32_0 = arith.constant 0 : i32
    %c0_i32_1 = arith.constant 0 : i32
    return %c0_i32, %c0_i32_0 : i32, i32
  }
  func.func @transform_5(%arg0: i32) -> (i32, i32) {
    %c0_i32 = arith.constant 0 : i32
    %c0_i32_0 = arith.constant 0 : i32
    %c0_i32_1 = arith.constant 0 : i32
    return %c0_i32, %c0_i32_0 : i32, i32
  }
  func.func @transform_6(%arg0: i32) -> (i32, i32) {
    %c0_i32 = arith.constant 0 : i32
    %c0_i32_0 = arith.constant 0 : i32
    %c0_i32_1 = arith.constant 0 : i32
    return %c0_i32, %c0_i32_0 : i32, i32
  }
  func.func @transform_7(%arg0: i32) -> (i32, i32) {
    %c0_i32 = arith.constant 0 : i32
    %c0_i32_0 = arith.constant 0 : i32
    %c0_i32_1 = arith.constant 0 : i32
    return %c0_i32, %c0_i32_0 : i32, i32
  }
  func.func @transform_8(%arg0: i32) -> (i32, i32) {
    %c0_i32 = arith.constant 0 : i32
    %c0_i32_0 = arith.constant 0 : i32
    %c0_i32_1 = arith.constant 0 : i32
    return %c0_i32, %c0_i32_0 : i32, i32
  }
  func.func @transform_9(%arg0: i32) -> (i32, i32) {
    %c0_i32 = arith.constant 0 : i32
    %c0_i32_0 = arith.constant 0 : i32
    %c0_i32_1 = arith.constant 0 : i32
    return %c0_i32, %c0_i32_0 : i32, i32
  }
  func.func @transform_10(%arg0: i32) -> (i32, i32) {
    %c0_i32 = arith.constant 0 : i32
    %c0_i32_0 = arith.constant 0 : i32
    %c0_i32_1 = arith.constant 0 : i32
    return %c0_i32, %c0_i32_0 : i32, i32
  }
  func.func @transform_11(%arg0: i32) -> (i32, i32) {
    %c0_i32 = arith.constant 0 : i32
    %c0_i32_0 = arith.constant 0 : i32
    %c0_i32_1 = arith.constant 0 : i32
    return %c0_i32, %c0_i32_0 : i32, i32
  }
  func.func @transform_12(%arg0: i32) -> (i32, i32) {
    %c0_i32 = arith.constant 0 : i32
    %c0_i32_0 = arith.constant 0 : i32
    %c0_i32_1 = arith.constant 0 : i32
    return %c0_i32, %c0_i32_0 : i32, i32
  }
  func.func @transform_13(%arg0: i32) -> (i32, i32) {
    %c0_i32 = arith.constant 0 : i32
    %c0_i32_0 = arith.constant 0 : i32
    %c0_i32_1 = arith.constant 0 : i32
    return %c0_i32, %c0_i32_0 : i32, i32
  }
  func.func @transform_14(%arg0: i32) -> (i32, i32) {
    %c0_i32 = arith.constant 0 : i32
    %c0_i32_0 = arith.constant 0 : i32
    %c0_i32_1 = arith.constant 0 : i32
    return %c0_i32, %c0_i32_0 : i32, i32
  }
  func.func @transform_15(%arg0: i32) -> (i32, i32) {
    %c0_i32 = arith.constant 0 : i32
    %c0_i32_0 = arith.constant 0 : i32
    %c0_i32_1 = arith.constant 0 : i32
    return %c0_i32, %c0_i32_0 : i32, i32
  }
  func.func @transform_16(%arg0: i32) -> (i32, i32) {
    %c0_i32 = arith.constant 0 : i32
    %c0_i32_0 = arith.constant 0 : i32
    %c0_i32_1 = arith.constant 0 : i32
    return %c0_i32, %c0_i32_0 : i32, i32
  }
  func.func @transform_17(%arg0: i32) -> (i32, i32) {
    %c0_i32 = arith.constant 0 : i32
    %c0_i32_0 = arith.constant 0 : i32
    %c0_i32_1 = arith.constant 0 : i32
    return %c0_i32, %c0_i32_0 : i32, i32
  }
  func.func @transform_18(%arg0: i32) -> (i32, i32) {
    %c0_i32 = arith.constant 0 : i32
    %c0_i32_0 = arith.constant 0 : i32
    %c0_i32_1 = arith.constant 0 : i32
    return %c0_i32, %c0_i32_0 : i32, i32
  }
  func.func @transform_19(%arg0: i32) -> (i32, i32) {
    %c0_i32 = arith.constant 0 : i32
    %c0_i32_0 = arith.constant 0 : i32
    %c0_i32_1 = arith.constant 0 : i32
    return %c0_i32, %c0_i32_0 : i32, i32
  }
}

</mosaic_0001>

<bundles_post_ra>
// kernel: tpu_custom_call.1
= control target key start
LH: loop header
LB: loop body
LE: loop exit
PB: predicated region body
PF: predicated region fallthrough
CT: control target
= control target key end

     0   :  { %s2785_s0 = inlined_call_operand.vmem [shape: f32[16,8], index: 0, kind: input, shape index: {}]   ;;  %s2786_s1 = inlined_call_operand.vmem [shape: f32[48,8], index: 1, kind: input, shape index: {}]   ;;  %s2787_s2 = inlined_call_operand.vmem [shape: bf16[48,16], index: 2, kind: input, shape index: {}]   ;;  %s2788_s3 = inlined_call_operand.vmem [shape: bf16[48,16], index: 3, kind: input, shape index: {}]   ;;  %s2789_s4 = inlined_call_operand.vmem [shape: bf16[4,128], index: 4, kind: input, shape index: {}]   ;;  %s2790_s5 = inlined_call_operand.vmem [shape: f32[128,4], index: 5, kind: input, shape index: {}]   ;;  %s2791_s6 = inlined_call_operand.vmem [shape: f32[8,128], index: 6, kind: input, shape index: {}]   ;;  %s2792_s7 = inlined_call_operand.vmem [shape: f32[1,128], index: 7, kind: input, shape index: {}]   ;;  %s2793_s8 = inlined_call_operand.vmem [shape: f32[8,128], index: 8, kind: input, shape index: {}]   ;;  %s2794_s9 = inlined_call_operand.vmem [shape: f32[1,128], index: 9, kind: input, shape index: {}]   ;;  %s2795_s10 = inlined_call_operand.vmem [shape: f32[8,128], index: 10, kind: input, shape index: {}]   ;;  %s2796_s11 = inlined_call_operand.vmem [shape: f32[1,128], index: 11, kind: input, shape index: {}]   ;;  %s2797_s12 = inlined_call_operand.vmem [shape: f32[8,128], index: 12, kind: input, shape index: {}]   ;;  %s2798_s13 = inlined_call_operand.vmem [shape: f32[8,128], index: 13, kind: input, shape index: {}]   ;;  %s2799_s14 = inlined_call_operand.vmem [shape: f32[1,128], index: 14, kind: input, shape index: {}]   ;;  %s2800_s15 = inlined_call_operand.vmem [shape: f32[1,128], index: 15, kind: input, shape index: {}]   ;;  %s2801_s16 = inlined_call_operand.vmem [shape: f32[1,128], index: 16, kind: input, shape index: {}]   ;;  %s2802_s17 = inlined_call_operand.vmem [shape: f32[1,128], index: 17, kind: input, shape index: {}]   ;;  %s2803_s18 = inlined_call_operand.vmem [shape: f32[1,128], index: 18, kind: input, shape index: {}]   ;;  %s2804_s19 = inlined_call_operand.hbm [shape: f32[16,128], index: 19, kind: output, shape index: {}]  }
   0x1   :  { %2809 = sst [smem:[#allocation10_spill]] %s2785_s0 }
   0x2   :  { %2810 = sst [smem:[#allocation11_spill]] %s2786_s1 }
   0x3   :  { %2811 = sst [smem:[#allocation12_spill]] %s2787_s2 }
   0x4   :  { %2812 = sst [smem:[#allocation13_spill]] %s2788_s3 }
   0x5   :  { %2813 = sst [smem:[#allocation14_spill]] %s2801_s16 }
   0x6   :  { %2814 = sst [smem:[#allocation15_spill]] %s2804_s19 }
   0x7   :  { %24 = vsyncpa [#allocation7], 0  ;;  %s2514_s0 = smov 0  }
   0x8 LB: > { %2815 = sst [smem:[#allocation9_spill]] %s2406_s0  ;;  %s2520_s30 = sadd.s32 4294967295, %s2406_s0   ;;  %s2406_s0 = sphi %s2514_s0, %s30_s0  }
   0x9   : > { %p2008_p0 = scmp.ge.s32.totalorder %s2406_s0, 1  ;;  %p556_p1 = scmp.lt.s32.totalorder %s2406_s0, 4 }
   0xb   : > { %p557_p2 = pnand %p2008_p0, %p556_p1 }
   0xc   : > { %s2009_s20 = sshll.u32 (!%p557_p2), %s2520_s30, 1  ;;  %s2816_s23 = sld [smem:[#allocation11_spill]] (!%p557_p2) }
   0xd   : > { %560 = sbr.rel (%p557_p2) target bundleno = 1888 (0x760), region = 96  ;;  %p618_p3 = scmp.lt.s32.totalorder (!%p557_p2), %s2009_s20, 5 }
   0xe   : > { %s2817_s26 = sld [smem:[#allocation12_spill]] (!%p557_p2)  ;;  %s2818_s0 = sld [smem:[#allocation13_spill]] (!%p557_p2) }
   0xf   : > { %p2015_p4 = scmp.ne.s32.totalorder (!%p557_p2), %s2520_s30, 0 }
  0x14   : > { %s2825_s20 = smov (!%p618_p3, %s2009_s20), 5  ;;  %639 = sbr.rel (%p2015_p4) target bundleno = 487 (0x1e7), region = 100 }
  0x15   : > { %s2010_s21 = sshll.u32 %s2825_s20, 3  ;;  %s2012_s1 = sshll.u32 %s2825_s20, 2  ;;  %v645_v0 = vld [vmem:[%s2791_s6] sm:$0xff] (!%p2015_p4)  ;;  %vm643_vm0 = vcmask (!%p2015_p4), 64512   ;;  %v829_v6 = vld [vmem:[%s2790_s5 + $0x8] sm:$0xff] (!%p2015_p4)  ;;  %v830_v8 = vld [vmem:[%s2790_s5 + $0x10] sm:$0xff] (!%p2015_p4) }
  0x16   : > { %s2528_s24 = scalar_lea.vmem %s2816_s23, %s2010_s21  ;;  %s2533_s27 = scalar_lea.vmem %s2817_s26, %s2012_s1  ;;  %2127 = vmatprep.subr.mxu1 (!%p2015_p4), %v645_v0  ;;  %v734_v4 = vld [vmem:[%s2793_s8] sm:$0xff] (!%p2015_p4)  ;;  %v831_v9 = vld [vmem:[%s2790_s5 + $0x18] sm:$0xff] (!%p2015_p4)  ;;  %v833_v12 = vld [vmem:[%s2790_s5 + $0x28] sm:$0xff] (!%p2015_p4)  ;;  %vm922_vm1 = vcmask (!%p2015_p4), 31744   ;;  %v2408_v49 = vmov (!%p2015_p4), 0.0  }
  0x17   : > { %s2538_s19 = scalar_lea.vmem %s2818_s0, %s2012_s1  ;;  %s2819_s2 = sld [smem:[#allocation10_spill]] (!%p2015_p4)  ;;  %v828_v5 = vld [vmem:[%s2790_s5] sm:$0xff] (!%p2015_p4)  ;;  %2128 = vmatpush3.msra.mxu1 (!%p2015_p4), %v645_v0  ;;  %v2277_v10 = vpack.c.bf16 (!%p2015_p4), %v831_v9, %v830_v8  ;;  %v834_v14 = vld [vmem:[%s2790_s5 + $0x30] sm:$0xff] (!%p2015_p4)  ;;  %v835_v15 = vld [vmem:[%s2790_s5 + $0x38] sm:$0xff] (!%p2015_p4)  ;;  %924 = vst [vmem:[#allocation4] sm:$0xff] (!%p2015_p4), %v2408_v49 }
  0x18   : > { %v2273_v7 = vpack.c.bf16 (!%p2015_p4), %v829_v6, %v828_v5  ;;  %2132 = vmatprep.subr.mxu1 (!%p2015_p4), %v734_v4  ;;  %v832_v11 = vld [vmem:[%s2790_s5 + $0x20] sm:$0xff] (!%p2015_p4)  ;;  %v2285_v16 = vpack.c.bf16 (!%p2015_p4), %v835_v15, %v834_v14  ;;  %v837_v18 = vld [vmem:[%s2790_s5 + $0x48] sm:$0xff] (!%p2015_p4)  ;;  %v838_v20 = vld [vmem:[%s2790_s5 + $0x50] sm:$0xff] (!%p2015_p4)  ;;  %925 = vst [vmem:[#allocation4 + $0x8] sm:$0xff] (!%p2015_p4), %v2408_v49 }
  0x19   : > { %v2281_v13 = vpack.c.bf16 (!%p2015_p4), %v833_v12, %v832_v11  ;;  %v836_v17 = vld [vmem:[%s2790_s5 + $0x40] sm:$0xff] (!%p2015_p4)  ;;  %v839_v21 = vld [vmem:[%s2790_s5 + $0x58] sm:$0xff] (!%p2015_p4)  ;;  %v841_v24 = vld [vmem:[%s2790_s5 + $0x68] sm:$0xff] (!%p2015_p4)  ;;  %926 = vst.msk [vmem:[#allocation5] sm:$0xff] (!%p2015_p4), %vm922_vm1, %v2408_v49 }
  0x1a   : > { %2274 = vmatprep.subr.bf16.mxu0 (!%p2015_p4), %v2273_v7  ;;  %v2289_v19 = vpack.c.bf16 (!%p2015_p4), %v837_v18, %v836_v17  ;;  %v840_v22 = vld [vmem:[%s2790_s5 + $0x60] sm:$0xff] (!%p2015_p4)  ;;  %v2293_v23 = vpack.c.bf16 (!%p2015_p4), %v839_v21, %v838_v20  ;;  %v842_v26 = vld [vmem:[%s2790_s5 + $0x70] sm:$0xff] (!%p2015_p4)  ;;  %v843_v27 = vld [vmem:[%s2790_s5 + $0x78] sm:$0xff] (!%p2015_p4)  ;;  %927 = vst.msk [vmem:[#allocation5 + $0x8] sm:$0xff] (!%p2015_p4), %vm922_vm1, %v2408_v49 }
  0x1b   : > { %2276 = vmatpush3.bf16.msra.mxu0 %v2273_v7  ;;  %v2297_v25 = vpack.c.bf16 %v841_v24, %v840_v22  ;;  %v2301_v28 = vpack.c.bf16 %v843_v27, %v842_v26  ;;  %v2019_v31 = vld [vmem:[%s2794_s9] ss:$0 sm:$0xff] }
  0x1c   : > { %2278 = vmatprep.subr.bf16.mxu0 %v2277_v10  ;;  %v2016_v42 = vld [vmem:[%s2792_s7] ss:$0 sm:$0xff] }
  0x1d   : > { %v640_v1 = vld [vmem:[%s2819_s2] sm:$0xff]  ;;  %v641_v2 = vld [vmem:[%s2819_s2 + $0x8] sm:$0xff] }
  0x1e   : > { %2129 = vmatprep.mubr.msk.f32.mxu1 %vm643_vm0, %v640_v1  ;;  %v642_v3 = vpack.c.bf16 %v641_v2, %v640_v1 }
  0x1f   : > { %2130 = vmatmul.mubr.msk.f32.vlgmr.msra.gmra.mrb[0].mxu1 %vm643_vm0, %v641_v2  ;;  %2280 = vmatpush3.bf16.msra.mxu0 %v2277_v10 }
  0x20   : > { %644 = vst.msk [vmem:[#allocation2] sm:$0xff] %vm643_vm0, %v642_v3  ;;  %2133 = vmatpush3.msra.mxu1 %v734_v4  ;;  %2134 = vmatprep.mubr.msk.f32.mxu1 %vm643_vm0, %v640_v1 }
  0x21   : > { %2282 = vmatprep.subr.bf16.mxu0 %v2281_v13 }
  0x23   : > { %2135 = vmatmul.mubr.msk.f32.vlgmr.msra.gmra.mrb[2].mxu1 %vm643_vm0, %v641_v2  ;;  %2284 = vmatpush3.bf16.msra.mxu0 %v2281_v13 }
  0x24   : > { %2286 = vmatprep.subr.bf16.mxu0 %v2285_v16 }
  0x27   : > { %2288 = vmatpush3.bf16.msra.mxu0 %v2285_v16 }
  0x28   : > { %2290 = vmatprep.subr.bf16.mxu0 %v2289_v19 }
  0x2b   : > { %2292 = vmatpush3.bf16.msra.mxu0 %v2289_v19 }
  0x2c   : > { %2294 = vmatprep.subr.bf16.mxu0 %v2293_v23 }
  0x2f   : > { %2296 = vmatpush3.bf16.msra.mxu0 %v2293_v23 }
  0x30   : > { %2298 = vmatprep.subr.bf16.mxu0 %v2297_v25 }
  0x33   : > { %2300 = vmatpush3.bf16.msra.mxu0 %v2297_v25 }
  0x34   : > { %2302 = vmatprep.subr.bf16.mxu0 %v2301_v28 }
  0x37   : > { %2304 = vmatpush3.bf16.msra.mxu0 %v2301_v28 }
  0xf2   : > { %v2131_v29 = vpop.f32.mrb[0].mxu1 }
  0xf3   : > { %v725_v30 = vpop.f32.mrb[1].mxu1  ;;  %v731_v44 = vadd.f32 %v2131_v29, %v2016_v42 }
  0xf4   : > { %v726_v45 = vadd.f32 %v2016_v42, %v725_v30 }
  0xf6   : > { %v2136_v32 = vpop.f32.mrb[2].mxu1 }
  0xf7   : > { %v814_v33 = vadd.f32 %v2136_v32, %v2019_v31  ;;  %v808_v34 = vpop.f32.mrb[3].mxu1 }
  0xf8   : > { %v809_v35 = vadd.f32 %v2019_v31, %v808_v34 }
  0xfa   : > { %v817_v36 = vadd.f32 %v814_v33, %v809_v35 }
  0xfc   : > { %v818_v37 = vrot.slane %v817_v36, 4 }
  0xfe   : > { %v819_v38 = vadd.f32 %v818_v37, %v817_v36 }
 0x100   : > { %v820_v39 = vrot.slane %v819_v38, 2 }
 0x102   : > { %v821_v40 = vadd.f32 %v820_v39, %v819_v38 }
 0x104   : > { %v822_v41 = vrot.slane %v821_v40, 1 }
 0x106   : > { %v823_v43 = vadd.f32 %v822_v41, %v821_v40 }
 0x108   : > { %v825_v46 = vmul.f32 0.0625, %v823_v43 }
 0x10a   : > { %v826_v47 = vmul.f32 %v825_v46, %v726_v45  ;;  %v827_v48 = vmul.f32 %v825_v46, %v731_v44 }
 0x10c   : > { %2169 = vmatprep.mubr.f32.mxu0 %v826_v47 }
 0x10d   : > { %2170 = vmatmul.mubr.f32.vlgmr.msra.gmra.mrb[0].mxu0 %v827_v48 }
 0x1e0   : > { %v2171_v50 = vpop.f32.mrb[0].mxu0 }
 0x1e1   : > { %v920_v51 = vmul.f32 0.35355338, %v2171_v50  ;;  %v910_v52 = vpop.f32.mrb[1].mxu0 }
 0x1e2   : > { %v919_v53 = vmul.f32 0.35355338, %v910_v52 }
 0x1e4   : > { %v921_v54 = vpack.c.bf16 %v920_v51, %v919_v53 }
 0x1e6   : > { %923 = vst.msk [vmem:[#allocation3] sm:$0xff] %vm922_vm1, %v921_v54 }
 0x1e7 PF: > { %v932_v55 = vld [vmem:[#allocation2] sm:$0xff]  ;;  %v2409_v57 = vmov 0.0   ;;  %vm938_vm2 = vcmask 130048   ;;  %vm2410_vm3 = vmmov 0   ;;  %vm1040_vm4 = vcmask 64512   ;;  %v1385_v0 = vld [vmem:[%s2790_s5 + $0x8] sm:$0xff] }
 0x1e8   : > { %v2358_v56 = vld [vmem:[%s2533_s27] sm:$0xff]   ;;  %2172 = vmatprep.subr.bf16.mxu0 %v2409_v57  ;;  %2178 = vmatprep.subr.bf16.mxu1 %v2409_v57  ;;  %v1386_v9 = vld [vmem:[%s2790_s5 + $0x10] sm:$0xff]  ;;  %v1387_v10 = vld [vmem:[%s2790_s5 + $0x18] sm:$0xff]  ;;  %vm1531_vm5 = vcmask 1041408   ;;  %vm1527_vm6 = vcmask 31744   ;;  %p2041_p5 = scmp.ne.s32.totalorder %s2520_s30, 2 }
 0x1e9   : > { %v2616_v58 = vld [vmem:[%s2538_s19] sm:$0xff]   ;;  %2173 = vmatpush3.bf16.msra.mxu0 %v932_v55  ;;  %2179 = vmatpush3.bf16.msra.mxu1 %v932_v55  ;;  %v1295_v13 = vld [vmem:[%s2528_s24 + $0x8] sm:$0xff]  ;;  %v2309_v14 = vpack.c.bf16 %v1387_v10, %v1386_v9  ;;  %v1390_v18 = vld [vmem:[%s2790_s5 + $0x30] sm:$0xff]  ;;  %vm1709_vm7 = vcmask (!%p2041_p5), 1043456   ;;  %s2820_s16 = sld [smem:[#allocation10_spill]] (!%p2041_p5)  ;;  %s2821_s1 = sld [smem:[#allocation14_spill]] (!%p2041_p5) }
 0x1ea   : > { %v1122_v59 = vld [vmem:[%s2793_s8] sm:$0xff]  ;;  %2174 = vmatprep.mubr.msk.bf16.mxu0 %vm2410_vm3, %v2409_v57  ;;  %2180 = vmatprep.mubr.msk.bf16.mxu1 %vm2410_vm3, %v2409_v57  ;;  %v1389_v16 = vld [vmem:[%s2790_s5 + $0x28] sm:$0xff]  ;;  %v1391_v19 = vld [vmem:[%s2790_s5 + $0x38] sm:$0xff] }
 0x1eb   : > { %2189 = vmatprep.subr.mxu1 %v1122_v59  ;;  %1582 = vxpose.xlu0.c.b16.start.end [1/1] (short) (narrow) %v2616_v58, 16  ;;  %v1032_v60 = vld [vmem:[%s2791_s6] sm:$0xff]  ;;  %v2317_v20 = vpack.c.bf16 %v1391_v19, %v1390_v18  ;;  %v1393_v22 = vld [vmem:[%s2790_s5 + $0x48] sm:$0xff]  ;;  %v1394_v24 = vld [vmem:[%s2790_s5 + $0x50] sm:$0xff] }
 0x1ec   : > { %2175 = vmatmul.mubr.msk.bf16.vlgmr.msra.gmra.mrb[0].mxu0 %vm938_vm2, %v2358_v56  ;;  %2181 = vmatmul.mubr.msk.bf16.vlgmr.msra.gmra.mrb[0].mxu1 %vm938_vm2, %v2616_v58  ;;  %v1211_v61 = vld [vmem:[%s2795_s10] sm:$0xff]  ;;  %v1395_v25 = vld [vmem:[%s2790_s5 + $0x58] sm:$0xff]  ;;  %v1397_v28 = vld [vmem:[%s2790_s5 + $0x68] sm:$0xff] }
 0x1ed   : > { %2190 = vmatpush3.msra.mxu1 %v1122_v59  ;;  %2184 = vmatprep.subr.mxu0 %v1032_v60  ;;  %v1296_v62 = vld [vmem:[%s2797_s12] sm:$0xff]  ;;  %v2325_v26 = vpack.c.bf16 %v1395_v25, %v1394_v24  ;;  %v1398_v30 = vld [vmem:[%s2790_s5 + $0x70] sm:$0xff]  ;;  %v1399_v31 = vld [vmem:[%s2790_s5 + $0x78] sm:$0xff] }
 0x1ee   : > { %2185 = vmatpush3.msra.mxu0 %v1032_v60  ;;  %2199 = vmatprep.subr.mxu1 %v1296_v62  ;;  %v1384_v63 = vld [vmem:[%s2790_s5] sm:$0xff]  ;;  %v1477_v32 = vld [vmem:[#allocation3] sm:$0xff]  ;;  %v2333_v33 = vpack.c.bf16 %v1399_v31, %v1398_v30  ;;  %v1579_v19 = vld [vmem:[#allocation4] sm:$0xff] }
 0x1ef   : > { %2194 = vmatprep.subr.mxu0 %v1211_v61  ;;  %v1294_v7 = vld [vmem:[%s2528_s24] sm:$0xff]  ;;  %v2305_v8 = vpack.c.bf16 %v1385_v0, %v1384_v63 }
 0x1f0   : > { %v1388_v15 = vld [vmem:[%s2790_s5 + $0x20] sm:$0xff] }
 0x1f1   : > { %v2313_v17 = vpack.c.bf16 %v1389_v16, %v1388_v15  ;;  %v1392_v21 = vld [vmem:[%s2790_s5 + $0x40] sm:$0xff] }
 0x1f2   : > { %v2321_v23 = vpack.c.bf16 %v1393_v22, %v1392_v21  ;;  %v1396_v27 = vld [vmem:[%s2790_s5 + $0x60] sm:$0xff]  ;;  %v1580_v21 = vld [vmem:[#allocation4 + $0x8] sm:$0xff] }
 0x1f3   : > { %v2329_v29 = vpack.c.bf16 %v1397_v28, %v1396_v27  ;;  %v2029_v35 = vld [vmem:[%s2794_s9] ss:$0 sm:$0xff] }
 0x1f4   : > { %v2026_v39 = vld [vmem:[%s2792_s7] ss:$0 sm:$0xff] }
 0x1f5   : > { %v2032_v40 = vld [vmem:[%s2796_s11] ss:$0 sm:$0xff] }
 0x1f6   : > { %v1646_v27 = vld [vmem:[#allocation5] sm:$0xff] }
 0x251   : > { %v1590_v18 = vpop.trf.xlu0 }
 0x2bf   : > { %v976_v1 = vpop.f32.mrb[0].mxu0  ;;  %v1025_v2 = vpop.f32.mrb[0].mxu1 }
 0x2c0   : > { %v2176_v3 = vpop.f32.mrb[1].mxu0  ;;  %v2182_v4 = vpop.f32.mrb[1].mxu1  ;;  %2191 = vmatprep.mubr.msk.f32.mxu1 %vm1040_vm4, %v976_v1  ;;  %2186 = vmatprep.mubr.msk.f32.mxu0 %vm1040_vm4, %v1025_v2 }
 0x2c1   : > { %v979_v5 = vpop.f32.mrb[2].mxu0  ;;  %v1028_v6 = vpop.f32.mrb[2].mxu1 }
 0x2c2   : > { %v2177_v11 = vpop.f32.mrb[3].mxu0  ;;  %2187 = vmatmul.mubr.msk.f32.vlgmr.msra.gmra.mrb[4].mxu0 %vm1040_vm4, %v1028_v6  ;;  %2192 = vmatmul.mubr.msk.f32.vlgmr.msra.gmra.mrb[4].mxu1 %vm1040_vm4, %v979_v5  ;;  %v2183_v12 = vpop.f32.mrb[3].mxu1 }
 0x2c3   : > { %2196 = vmatprep.mubr.msk.f32.mxu0 %vm1040_vm4, %v976_v1  ;;  %2195 = vmatpush3.msra.mxu0 %v1211_v61 }
 0x2c4   : > { %2200 = vmatpush3.msra.mxu1 %v1296_v62  ;;  %2201 = vmatprep.mubr.msk.f32.mxu1 %vm1040_vm4, %v1294_v7  ;;  %v1526_v62 = vld [vmem:[%s2789_s4] sm:$0x3] }
 0x2c5   : > { %2306 = vmatprep.subr.bf16.mxu0 %v2305_v8  ;;  %2239 = vmatprep.subr.bf16.mxu1 %v2409_v57  ;;  %v1533_v63 = vsel %vm1531_vm5, %v1526_v62, 0  ;;  %v2048_v62 = vld [vmem:[%s2802_s17] ss:$0 sm:$0xff] (!%p2041_p5) }
 0x2c6   : > { %2197 = vmatmul.mubr.msk.f32.vlgmr.msra.gmra.mrb[6].mxu0 %vm1040_vm4, %v979_v5  ;;  %2202 = vmatmul.mubr.msk.f32.vlgmr.msra.gmra.mrb[6].mxu1 %vm1040_vm4, %v1295_v13 }
 0x2c7   : > { %2308 = vmatpush3.bf16.msra.mxu0 %v2305_v8  ;;  %2241 = vmatprep.mubr.msk.bf16.mxu1 %vm2410_vm3, %v2409_v57 }
 0x2c8   : > { %2310 = vmatprep.subr.bf16.mxu0 %v2309_v14  ;;  %2240 = vmatpush3.bf16.msra.mxu1 %v1477_v32 }
 0x2c9   : > { %2245 = vmatprep.subr.bf16.mxu1 %v2409_v57 }
 0x2cb   : > { %2312 = vmatpush3.bf16.msra.mxu0 %v2309_v14  ;;  %2242 = vmatmul.mubr.msk.bf16.vlgmr.msra.gmra.mrb[8].mxu1 %vm938_vm2, %v2616_v58 }
 0x2cc   : > { %2314 = vmatprep.subr.bf16.mxu0 %v2313_v17  ;;  %2247 = vmatprep.mubr.msk.bf16.mxu1 %vm2410_vm3, %v2409_v57 }
 0x2cd   : > { %2246 = vmatpush3.bf16.msra.mxu1 %v1533_v63 }
 0x2ce   : > { %2251 = vmatprep.subr.bf16.mxu1 %v2409_v57 }
 0x2cf   : > { %2316 = vmatpush3.bf16.msra.mxu0 %v2313_v17 }
 0x2d0   : > { %2318 = vmatprep.subr.bf16.mxu0 %v2317_v20 }
 0x2d3   : > { %2320 = vmatpush3.bf16.msra.mxu0 %v2317_v20 }
 0x2d4   : > { %2322 = vmatprep.subr.bf16.mxu0 %v2321_v23 }
 0x2d7   : > { %2324 = vmatpush3.bf16.msra.mxu0 %v2321_v23 }
 0x2d8   : > { %2326 = vmatprep.subr.bf16.mxu0 %v2325_v26 }
 0x2db   : > { %2328 = vmatpush3.bf16.msra.mxu0 %v2325_v26 }
 0x2dc   : > { %2330 = vmatprep.subr.bf16.mxu0 %v2329_v29 }
 0x2df   : > { %2332 = vmatpush3.bf16.msra.mxu0 %v2329_v29  ;;  %v1647_v29 = vld [vmem:[#allocation5 + $0x8] sm:$0xff] }
 0x2e0   : > { %2334 = vmatprep.subr.bf16.mxu0 %v2333_v33 }
 0x2e3   : > { %2336 = vmatpush3.bf16.msra.mxu0 %v2333_v33 }
 0x395   : > { %v2193_v34 = vpop.f32.mrb[4].mxu1  ;;  %v2188_v36 = vpop.f32.mrb[4].mxu0 }
 0x396   : > { %v1202_v37 = vpop.f32.mrb[5].mxu1  ;;  %v1113_v38 = vpop.f32.mrb[5].mxu0  ;;  %v1208_v41 = vadd.f32 %v2193_v34, %v2029_v35  ;;  %v1119_v45 = vadd.f32 %v2188_v36, %v2026_v39  ;;  %v1701_v34 = vld [vmem:[%s2789_s4] sm:$0x3] (!%p2041_p5) }
 0x397   : > { %v1203_v42 = vadd.f32 %v2029_v35, %v1202_v37  ;;  %v1114_v50 = vadd.f32 %v2026_v39, %v1113_v38  ;;  %v1702_v36 = vunpack.c.l.bf16 (!%p2041_p5), %v1701_v34  ;;  %v1798_v37 = vld [vmem:[%s2798_s13] sm:$0xff] (!%p2041_p5)  ;;  %v1698_v39 = vld [vmem:[%s2820_s16 + $0x8] sm:$0xff] (!%p2041_p5) }
 0x398   : > { %v1697_v38 = vld [vmem:[%s2820_s16] sm:$0xff] (!%p2041_p5) }
 0x399   : > { %v2198_v43 = vpop.f32.mrb[6].mxu0  ;;  %v2203_v44 = vpop.f32.mrb[6].mxu1  ;;  %2263 = vmatprep.subr.msk.mxu0 (!%p2041_p5), %vm1709_vm7, %v1702_v36 }
 0x39a   : > { %v1291_v46 = vadd.f32 %v2198_v43, %v2032_v40  ;;  %v1379_v47 = vadd.f32 %v2203_v44, %v1208_v41  ;;  %v1285_v48 = vpop.f32.mrb[7].mxu0  ;;  %v1369_v49 = vpop.f32.mrb[7].mxu1  ;;  %v1891_v41 = vld [vmem:[%s2803_s18] sm:$0x1] (!%p2041_p5) }
 0x39b   : > { %v1286_v51 = vadd.f32 %v2032_v40, %v1285_v48  ;;  %v1378_v52 = vadd.f32 %v1369_v49, %v1203_v42 }
 0x39c   : > { %v1381_v53 = vadd.f32 %v2203_v44, %v1291_v46  ;;  %v1383_v54 = vmul.f32 %v1379_v47, %v1119_v45  ;;  %v1892_v46 = vadd.f32 (!%p2041_p5), 1e-05, %v1891_v41 }
 0x39d   : > { %v1380_v55 = vadd.f32 %v1369_v49, %v1286_v51  ;;  %v1382_v56 = vmul.f32 %v1378_v52, %v1114_v50  ;;  %v1904_v49 = vlaneseq (!%p2041_p5) }
 0x39e   : > { %v1512_v58 = vpop.f32.mrb[8].mxu1 }
 0x39f   : > { %2236 = vmatprep.mubr.f32.mxu0 %v1382_v56  ;;  %v2243_v59 = vpop.f32.mrb[9].mxu1  ;;  %v1905_v50 = vshrl.u32 (!%p2041_p5), %v1904_v49, 7 }
 0x3a0   : > { %2237 = vmatmul.mubr.f32.vlgmr.msra.gmra.mrb[8].mxu0 %v1383_v54  ;;  %v1515_v60 = vpop.f32.mrb[10].mxu1  ;;  %v2047_v59 = vld [vmem:[%s2799_s14] ss:$0 sm:$0xff] (!%p2041_p5) }
 0x3a1   : > { %v2244_v61 = vpop.f32.mrb[11].mxu1  ;;  %2264 = vmatpush3.msk.msra.mxu0 (!%p2041_p5), %vm1709_vm7, %v1702_v36  ;;  %v1906_v56 = vsub.s32 (!%p2041_p5), 0, %v1905_v50 }
 0x473   : > { %v2238_v0 = vpop.f32.mrb[8].mxu0 }
 0x474   : > { %v1476_v1 = vmul.f32 0.35355338, %v2238_v0  ;;  %v1466_v2 = vpop.f32.mrb[9].mxu0 }
 0x475   : > { %v1475_v3 = vmul.f32 0.35355338, %v1466_v2 }
 0x476   : > { %v1520_v4 = vsub.f32 %v1476_v1, %v1515_v60 }
 0x477   : > { %v1519_v5 = vsub.f32 %v1475_v3, %v1512_v58 }
 0x478   : > { %v1523_v6 = vmul.f32 1.442695, %v1520_v4  ;;  %v2049_v4 = vld [vmem:[%s2800_s15] ss:$0 sm:$0xff] (!%p2041_p5) }
 0x479   : > { %v1521_v7 = vmul.f32 1.442695, %v1519_v5 }
 0x47a   : > { %2360 = vpow2.f32 %v1523_v6 }
 0x47b   : > { %2362 = vpow2.f32 %v1521_v7  ;;  %v2050_v7 = vld [vmem:[%s2821_s1] ss:$0 sm:$0xff] (!%p2041_p5) }
 0x484   : > { %v2361_v8 = vpop.eup %2360 }
 0x485   : > { %v2363_v9 = vpop.eup %2362 }
 0x486   : > { %v1525_v10 = vpack.c.bf16 %v2361_v8, %v2363_v9 }
 0x488   : > { %2248 = vmatmul.mubr.msk.bf16.vlgmr.msra.gmra.mrb[12].mxu1 %vm1527_vm6, %v1525_v10 }
 0x489   : > { %2253 = vmatprep.mubr.msk.bf16.mxu1 %vm2410_vm3, %v2409_v57 }
 0x55b   : > { %v1569_v11 = vpop.f32.mrb[12].mxu1 }
 0x55c   : > { %v1576_v12 = vmul.f32 %v1569_v11, %v1380_v55  ;;  %v2249_v13 = vpop.f32.mrb[13].mxu1 }
 0x55d   : > { %v1572_v14 = vpop.f32.mrb[14].mxu1 }
 0x55e   : > { %v1577_v15 = vmul.f32 %v1572_v14, %v1381_v53  ;;  %v2250_v16 = vpop.f32.mrb[15].mxu1 }
 0x560   : > { %v1578_v17 = vpack.c.bf16 %v1577_v15, %v1576_v12 }
 0x562   : > { %2252 = vmatpush3.bf16.msra.mxu1 %v1578_v17 }
 0x563   : > { %2257 = vmatprep.subr.bf16.mxu1 %v2409_v57 }
 0x565   : > { %2254 = vmatmul.mubr.msk.bf16.vlgmr.msra.gmra.mrb[16].mxu1 %vm938_vm2, %v1590_v18 }
 0x566   : > { %2258 = vmatpush3.bf16.msra.mxu1 %v1525_v10  ;;  %2259 = vmatprep.mubr.msk.bf16.mxu1 %vm2410_vm3, %v2409_v57 }
 0x567   : > { %2268 = vmatprep.subr.mxu1 (!%p2041_p5), %v1798_v37 }
 0x56d   : > { %2260 = vmatmul.mubr.msk.bf16.vlgmr.msra.gmra.mrb[20].mxu1 %vm938_vm2, %v1590_v18 }
 0x56e   : > { %2270 = vmatprep.mubr.msk.f32.mxu1 (!%p2041_p5), %vm1040_vm4, %v1697_v38  ;;  %2269 = vmatpush3.msra.mxu1 (!%p2041_p5), %v1798_v37 }
 0x575   : > { %2271 = vmatmul.mubr.msk.f32.vlgmr.msra.gmra.mrb[0].mxu1 (!%p2041_p5), %vm1040_vm4, %v1698_v39 }
 0x638   : > { %v1635_v20 = vpop.f32.mrb[16].mxu1 }
 0x639   : > { %v1642_v22 = vadd.f32 %v1635_v20, %v1579_v19  ;;  %v2255_v23 = vpop.f32.mrb[17].mxu1 }
 0x63a   : > { %v1638_v24 = vpop.f32.mrb[18].mxu1 }
 0x63b   : > { %1644 = vst [vmem:[#allocation4] sm:$0xff] %v1642_v22  ;;  %v1643_v25 = vadd.f32 %v1638_v24, %v1580_v21  ;;  %v2256_v26 = vpop.f32.mrb[19].mxu1 }
 0x63d   : > { %1645 = vst [vmem:[#allocation4 + $0x8] sm:$0xff] %v1643_v25 }
 0x63f   : > { %1696 = sbr.rel (%p2041_p5) target bundleno = 1856 (0x740), region = 104 }
 0x640   : > { %v1682_v28 = vpop.f32.mrb[20].mxu1 }
 0x641   : > { %v1689_v30 = vadd.f32 %v1682_v28, %v1646_v27  ;;  %v2261_v31 = vpop.f32.mrb[21].mxu1 }
 0x642   : > { %v1685_v32 = vpop.f32.mrb[22].mxu1  ;;  %v1792_v52 = vld [vmem:[#allocation4] sm:$0xff] (!%p2041_p5) }
 0x643   : > { %1691 = vst.msk [vmem:[#allocation5] sm:$0xff] %vm1527_vm6, %v1689_v30  ;;  %v1690_v57 = vadd.f32 %v1685_v32, %v1647_v29  ;;  %v2262_v33 = vpop.f32.mrb[23].mxu1 }
 0x644   : > { %v1793_v51 = vld [vmem:[#allocation4 + $0x8] sm:$0xff] (!%p2041_p5) }
 0x645   : > { %1692 = vst.msk [vmem:[#allocation5 + $0x8] sm:$0xff] %vm1527_vm6, %v1690_v57 }
 0x648   : > { %v2272_v42 = vpop.f32.mrb[0].mxu1 }
 0x649   : > { %v1871_v44 = vpop.f32.mrb[1].mxu1 }
 0x64a   : > { %v1699_v35 = vld [vmem:[#allocation5] sm:$0xff] }
 0x64b   : > { %2265 = vmatprep.mubr.msk.f32.mxu0 %vm1527_vm6, %v1699_v35 }
 0x64c   : > { %v1700_v40 = vld [vmem:[#allocation5 + $0x8] sm:$0xff] }
 0x64d   : > { %2266 = vmatmul.mubr.msk.f32.vlgmr.msra.gmra.mrb[0].mxu0 %vm1527_vm6, %v1700_v40 }
 0x720   : > { %v2267_v43 = vpop.f32.mrb[0].mxu0 }
 0x721   : > { %vm1789_vm8 = vcmp.gt.f32.partialorder %v2267_v43, 0.0  ;;  %v1779_v45 = vpop.f32.mrb[1].mxu0 }
 0x722   : > { %v1791_v47 = vsel %vm1789_vm8, %v2267_v43, 1.0  ;;  %vm1788_vm9 = vcmp.gt.f32.partialorder %v1779_v45, 0.0 }
 0x723   : > { %2364 = vrcp.f32 %v1791_v47  ;;  %v1790_v48 = vsel %vm1788_vm9, %v1779_v45, 1.0 }
 0x724   : > { %2366 = vrcp.f32 %v1790_v48 }
 0x725   : > { %2368 = vrsqrt.f32 %v1892_v46 }
 0x72d   : > { %v2365_v53 = vpop.eup %2364 }
 0x72e   : > { %v2367_v54 = vpop.eup %2366  ;;  %v1797_v55 = vmul.f32 %v2365_v53, %v1793_v51 }
 0x72f   : > { %v2369_v58 = vpop.eup %2368  ;;  %v1795_v60 = vmul.f32 %v2367_v54, %v1792_v52 }
 0x730   : > { %v1881_v61 = vadd.f32 %v2272_v42, %v1797_v55  ;;  %v1907_v1 = vrot.slane %v2369_v58, %v1906_v56 }
 0x731   : > { %v1880_v63 = vadd.f32 %v1871_v44, %v1795_v60 }
 0x732   : > { %v1890_v0 = vadd.f32 %v2047_v59, %v1881_v61 }
 0x733   : > { %v1889_v2 = vadd.f32 %v2047_v59, %v1880_v63 }
 0x734   : > { %v1902_v3 = vsub.f32 %v1890_v0, %v2048_v62 }
 0x735   : > { %v1901_v5 = vsub.f32 %v1889_v2, %v2048_v62 }
 0x736   : > { %v1910_v6 = vmul.f32 %v1907_v1, %v1902_v3 }
 0x737   : > { %v1909_v8 = vmul.f32 %v1907_v1, %v1901_v5 }
 0x738   : > { %v1919_v9 = vmul.f32 %v2049_v4, %v1910_v6 }
 0x739   : > { %v1918_v10 = vmul.f32 %v2049_v4, %v1909_v8 }
 0x73a   : > { %v1928_v11 = vadd.f32 %v2050_v7, %v1919_v9 }
 0x73b   : > { %v1927_v12 = vadd.f32 %v2050_v7, %v1918_v10 }
 0x73c   : > { %v1930_v13 = vmax.f32 %v1928_v11, 0.0 }
 0x73d   : > { %v1929_v14 = vmax.f32 %v1927_v12, 0.0 }
 0x73e   : > { %1932 = vst [vmem:[#allocation6 + $0x8] sm:$0xff] %v1930_v13 }
 0x73f   : > { %1931 = vst [vmem:[#allocation6] sm:$0xff] %v1929_v14 }
 0x740 PF: > { %p2341_p6 = scmp.eq.s32.totalorder %s2520_s30, 2  ;;  %s2411_s24 = smov [#allocation6]  }
 0x741   : > { %s1939_s3 = sshll.u32 %s2411_s24, 4  ;;  %s1940_s3 = int_to_ptr.vmem [resolvable:$true] %s1939_s3 }
 0x742   : > { %s2370_s16 = scalar_lea.vmem %s1940_s3, 256  ;;  %p2377_p10 = scmp.lt.s32.totalorder %s1940_s3, %s1940_s3 }
 0x743   : > { %p2371_p7 = scmp.ne.s32.totalorder %s1940_s3, %s2370_s16  ;;  %p2378_p11 = scmp.lt.s32.totalorder %s2370_s16, %s2370_s16 }
 0x745   : > { %p2372_p8 = pnand %p2371_p7, %p2341_p6  ;;  %p2379_p12 = por %p2378_p11, %p2377_p10 }
 0x747   : > { %p2373_p9 = pneg %p2372_p8 }
 0x749   : > { %p2380_p13 = pnand %p2379_p12, %p2373_p9 }
 0x74b   : > { %2383 = shalt.err (!%p2380_p13)
}
 0x74c   : > { %s2822_s29 = sld [smem:[#allocation15_spill]] }
 0x752   : > { %s2384_s20 = scalar_lea.hbm %s2822_s29, 256 }
 0x753   : > { %p2385_p0 = scmp.ne.s32.totalorder %s2822_s29, %s2384_s20  ;;  %p2390_p3 = scmp.lt.u32.totalorder %s2384_s20, %s2822_s29 }
 0x755   : > { %p2386_p1 = pnand %p2385_p0, %p2341_p6 }
 0x757   : > { %p2387_p2 = pneg %p2386_p1 }
 0x759   : > { %p2392_p4 = pnand %p2390_p3, %p2387_p2 }
 0x75b   : > { %2395 = shalt.err (!%p2392_p4)
}
 0x75c   : > { %s2412_s25 = smov 128   ;;  %s2413_s0 = smov 8  }
 0x75d   : > { %2338 = dma.vmem_to_hbm [thread:$0]  (%p2341_p6), %s1940_s3, 256, %s2822_s29, [#allocation7], %s2412_s25, %s2412_s25, %s2413_s0  }
 0x75e   : > { %2401 = dma.done.wait (%p2341_p6), [#allocation7], 256  }
 0x75f   : > { %2403 = vsyncadd (%p2341_p6), [#allocation7], 4294967040 }
 0x760 PF: > { %s2823_s1 = sld [smem:[#allocation9_spill]] }
 0x766   : > { %s30_s0 = sadd.s32 1, %s2823_s1  }
 0x767   : > { %p27_p5 = scmp.ge.s32.totalorder %s30_s0, 5  }
 0x769   :  { %29 = sbr.rel (!%p27_p5) target bundleno = 8 (0x8), region = 137 }
 0x770   :  { %1955 = vsyncpa [#allocation7], 1 }
 0x771   :  { %1957 = vsyncpa [#allocation7 + $0x1], 1 }

</bundles_post_ra>
